<compile_context>
chip_gen: v5e
topology: v5e:2x2
jax: 0.10.0
libtpu: 0.0.40
codegen_flags: <defaults>
</compile_context>

<pallas_src>
import functools

import jax
import jax.numpy as jnp
from jax.experimental import pallas as pl
from jax.experimental.pallas import tpu as pltpu

_LANE = 128
_VMEM_LIMIT_BYTES = 40 * 1024 * 1024  # < v7x 64 MiB physical; fine on v5e/v6e.


def _round_up(x, m):
    return ((x + m - 1) // m) * m


def _default_max_block_rows():
    """8192 rows (4 MiB f32 tiles) on v6e/v7x; 4096 on v5e (lower HBM BW)."""
    try:
        kind = jax.devices()[0].device_kind.lower()
    except Exception:
        return 4096
    if "v5 lite" in kind or "v5e" in kind or "v5lite" in kind:
        return 4096
    return 8192


def _row_align(*dtypes):
    """Sublane alignment for the block row count (8 f32 / 16 bf16 / 32 int8)."""
    a = 8
    for dt in dtypes:
        itemsize = jnp.dtype(dt).itemsize
        a = max(a, 8 * (4 // max(itemsize, 1)))
    return a


def _make_bce_kernel(ignore_label: float, rows_total: int, block_rows: int,
                     needs_row_mask: bool, acc_rows: int):
    """Masked BCE-with-logits partial-sum kernel over (block_rows, 128) tiles."""
    sub_blocks = block_rows // 8 if acc_rows == 8 else None

    def kernel(pred_ref, tgt_ref, out_ref, loss_acc, cnt_acc):
        c = pl.program_id(0)  # "parallel" core axis
        i = pl.program_id(1)  # "arbitrary" reduction axis

        @pl.when(i == 0)
        def _():
            loss_acc[...] = jnp.zeros_like(loss_acc)
            cnt_acc[...] = jnp.zeros_like(cnt_acc)

        def accumulate(apply_row_mask):
            x = pred_ref[...].astype(jnp.float32)
            t = tgt_ref[...].astype(jnp.float32)

            # valid = (target >= 0) & (target != ignore_label)
            valid = jnp.logical_and(t >= 0.0, t != ignore_label)

            if apply_row_mask:
                # Only the globally-last block can be partial: mask rows whose
                # global row index is past the true row count (no value-based
                # padding, no element-index int32 overflow).
                row = jax.lax.broadcasted_iota(jnp.int32, x.shape, 0)
                grow = (c * pl.num_programs(1) + i) * block_rows + row
                valid = jnp.logical_and(valid, grow < rows_total)

            # numerically stable: max(x,0) - x*t + log1p(exp(-|x|))
            loss = jnp.maximum(x, 0.0) - x * t + jnp.log1p(jnp.exp(-jnp.abs(x)))
            loss = jnp.where(valid, loss, 0.0)
            vcnt = valid.astype(jnp.float32)

            if acc_rows == 8:
                # vreg-native accumulation: pure VALU adds, no per-step XLU.
                loss_acc[...] += loss.reshape(sub_blocks, 8, _LANE).sum(axis=0)
                cnt_acc[...] += vcnt.reshape(sub_blocks, 8, _LANE).sum(axis=0)
            else:
                loss_acc[...] += jnp.sum(loss, axis=0, keepdims=True)
                cnt_acc[...] += jnp.sum(vcnt, axis=0, keepdims=True)

        if needs_row_mask:
            is_last = jnp.logical_and(c == pl.num_programs(0) - 1,
                                      i == pl.num_programs(1) - 1)

            @pl.when(is_last)
            def _():
                accumulate(True)

            @pl.when(jnp.logical_not(is_last))
            def _():
                accumulate(False)
        else:
            accumulate(False)

        # Single lane-dense output write per core, only on its last step.
        @pl.when(i == pl.num_programs(1) - 1)
        def _():
            s = jnp.sum(loss_acc[...])
            cnt = jnp.sum(cnt_acc[...])
            lane = jax.lax.broadcasted_iota(jnp.int32, (1, _LANE), 1)
            out_ref[...] = jnp.where(lane == 0, s,
                                     jnp.where(lane == 1, cnt, 0.0))

    return kernel


@functools.partial(
    jax.jit,
    static_argnames=("size_average", "ignore_label", "max_block_rows"))
def bce_with_logits_loss_2d(predict, target, size_average=True,
                            ignore_label=255, max_block_rows=None):
    """Pallas equivalent of BCEWithLogitsLoss2d.forward (weight=None)."""
    assert predict.ndim == 4, "predict must be (n, 1, h, w)"
    assert target.ndim == 4, "target must be (n, 1, h, w)"
    assert predict.shape[0] == target.shape[0]
    assert predict.shape[2] == target.shape[2]
    assert predict.shape[3] == target.shape[3]

    if max_block_rows is None:
        max_block_rows = _default_max_block_rows()

    ign = float(ignore_label)
    total = predict.size
    rows = total // _LANE
    rem = total - rows * _LANE

    pred_flat = predict.reshape(-1)
    tgt_flat = target.reshape(-1)

    # --- <128-element tail: plain JAX (avoids the old full-array jnp.pad copy)
    if rem:
        xt = pred_flat[rows * _LANE:].astype(jnp.float32)
        tt = tgt_flat[rows * _LANE:].astype(jnp.float32)
        valid_t = jnp.logical_and(tt >= 0.0, tt != ign)
        loss_t = jnp.maximum(xt, 0.0) - xt * tt + jnp.log1p(jnp.exp(-jnp.abs(xt)))
        tail_sum = jnp.sum(jnp.where(valid_t, loss_t, 0.0))
        tail_cnt = jnp.sum(valid_t.astype(jnp.float32))
    else:
        tail_sum = jnp.float32(0.0)
        tail_cnt = jnp.float32(0.0)

    if rows == 0:
        total_sum, total_cnt = tail_sum, tail_cnt
    else:
        align = _row_align(predict.dtype, target.dtype)
        max_rows = _round_up(int(max_block_rows), align)

        if rows < 256:
            # Tiny: one core, one full-array block (always a legal block shape).
            ncores, steps, block_rows = 1, 1, rows
        else:
            ncores = 2  # v7x uses both TensorCores; no-op on 1-TC chips.
            steps = max(pl.cdiv(pl.cdiv(rows, max_rows), ncores), 1)
            nblocks = ncores * steps
            block_rows = _round_up(pl.cdiv(rows, nblocks), align)
            # Never allow a fully out-of-bounds block.
            while steps > 1 and (nblocks - 1) * block_rows >= rows:
                steps -= 1
                nblocks = ncores * steps
                block_rows = _round_up(pl.cdiv(rows, nblocks), align)

        nblocks = ncores * steps
        needs_row_mask = (nblocks * block_rows) != rows
        acc_rows = 8 if block_rows % 8 == 0 else 1

        # Kernel consumes only the 128-aligned prefix (native dtype, no pad).
        if rem:
            pred2 = pred_flat[: rows * _LANE].reshape(rows, _LANE)
            tgt2 = tgt_flat[: rows * _LANE].reshape(rows, _LANE)
        else:
            pred2 = pred_flat.reshape(rows, _LANE)
            tgt2 = tgt_flat.reshape(rows, _LANE)

        in_map = lambda c, i: (c * steps + i, 0)  # noqa: E731
        out = pl.pallas_call(
            _make_bce_kernel(ign, int(rows), int(block_rows),
                             bool(needs_row_mask), int(acc_rows)),
            out_shape=jax.ShapeDtypeStruct((ncores, _LANE), jnp.float32),
            grid_spec=pltpu.PrefetchScalarGridSpec(
                num_scalar_prefetch=0,
                grid=(ncores, steps),
                in_specs=[pl.BlockSpec((block_rows, _LANE), in_map),
                          pl.BlockSpec((block_rows, _LANE), in_map)],
                out_specs=pl.BlockSpec((1, _LANE), lambda c, i: (c, 0)),
                scratch_shapes=[pltpu.VMEM((acc_rows, _LANE), jnp.float32),
                                pltpu.VMEM((acc_rows, _LANE), jnp.float32)]),
            compiler_params=pltpu.CompilerParams(
                dimension_semantics=("parallel", "arbitrary"),
                vmem_limit_bytes=_VMEM_LIMIT_BYTES),
        )(pred2, tgt2)

        total_sum = jnp.sum(out[:, 0]) + tail_sum
        total_cnt = jnp.sum(out[:, 1]) + tail_cnt

    # PyTorch returns zeros(1) when there is no valid target; we return 0.0.
    if size_average:
        return jnp.where(total_cnt > 0,
                         total_sum / jnp.maximum(total_cnt, 1.0),
                         jnp.float32(0.0))
    return jnp.where(total_cnt > 0, total_sum, jnp.float32(0.0))


def _reference_loss(predict, target, size_average=True, ignore_label=255):
    """Pure-JAX reference for sanity checking."""
    x = predict.reshape(-1).astype(jnp.float32)
    t = target.reshape(-1).astype(jnp.float32)
    valid = jnp.logical_and(t >= 0.0, t != float(ignore_label))
    loss = jnp.maximum(x, 0.0) - x * t + jnp.log1p(jnp.exp(-jnp.abs(x)))
    loss = jnp.where(valid, loss, 0.0)
    n_valid = jnp.sum(valid.astype(jnp.float32))
    s = jnp.sum(loss)
    if size_average:
        return jnp.where(n_valid > 0, s / jnp.maximum(n_valid, 1.0), 0.0)
    return jnp.where(n_valid > 0, s, 0.0)


def _make_inputs(key, shape, ignore_frac=0.1, ignore_label=255.0):
    k_pred, k_tgt, k_ign = jax.random.split(key, 3)
    predict = jax.random.normal(k_pred, shape, dtype=jnp.float32)
    target = jax.random.bernoulli(k_tgt, 0.5, shape).astype(jnp.float32)
    ignore_mask = jax.random.bernoulli(k_ign, ignore_frac, shape)
    target = jnp.where(ignore_mask, ignore_label, target)
    return predict, target


if __name__ == "__main__":
    key = jax.random.PRNGKey(0)
    k1, k2, k3, k4, k5 = jax.random.split(key, 5)

    # 1) Basic (n,1,h,w) = (2,1,16,16): single block, no tail.
    p1, t1 = _make_inputs(k1, (2, 1, 16, 16))
    loss1 = jax.block_until_ready(bce_with_logits_loss_2d(p1, t1))
    ref1 = _reference_loss(p1, t1)
    assert jnp.allclose(loss1, ref1, rtol=1e-5, atol=1e-6), (loss1, ref1)

    # 2) Unaligned total (930 elements): wrapper tail path, sum reduction.
    p2, t2 = _make_inputs(k2, (1, 1, 30, 31))
    loss2 = jax.block_until_ready(
        bce_with_logits_loss_2d(p2, t2, size_average=False))
    ref2 = _reference_loss(p2, t2, size_average=False)
    assert jnp.allclose(loss2, ref2, rtol=1e-5, atol=1e-5), (loss2, ref2)

    # 3) Multi-step grid on one core (forced small blocks): accumulator +
    #    last-step finalize across several grid iterations.
    p3, t3 = _make_inputs(k3, (2, 1, 32, 32))
    loss3 = jax.block_until_ready(
        bce_with_logits_loss_2d(p3, t3, max_block_rows=4))
    ref3 = _reference_loss(p3, t3)
    assert jnp.allclose(loss3, ref3, rtol=1e-5, atol=1e-6), (loss3, ref3)

    # 4) Partial last block (row mask on last step only) + non-empty JAX tail.
    p4, t4 = _make_inputs(k4, (1, 1, 129, 130))
    loss4 = jax.block_until_ready(
        bce_with_logits_loss_2d(p4, t4, max_block_rows=64))
    ref4 = _reference_loss(p4, t4)
    assert jnp.allclose(loss4, ref4, rtol=1e-5, atol=1e-5), (loss4, ref4)

    # 5) 2-way "parallel" core split + partial last block.
    p5, t5 = _make_inputs(k5, (2, 1, 130, 128))
    loss5 = jax.block_until_ready(
        bce_with_logits_loss_2d(p5, t5, max_block_rows=64))
    ref5 = _reference_loss(p5, t5)
    assert jnp.allclose(loss5, ref5, rtol=1e-5, atol=1e-5), (loss5, ref5)

    # 6) All-ignore -> 0.0 (matches PyTorch's zeros(1) early return).
    t_ign = jnp.full((2, 1, 16, 16), 255.0, jnp.float32)
    loss6 = jax.block_until_ready(bce_with_logits_loss_2d(p1, t_ign))
    assert jnp.allclose(loss6, 0.0), loss6

    print("KERNEL_OK")
</pallas_src>

<mosaic_0001>
module attributes {stable_mosaic.version = 11 : i64} {
  func.func @kernel(%arg0: i32, %arg1: i32, %arg2: memref<4x128xf32, #tpu.memory_space<vmem>>, %arg3: memref<4x128xf32, #tpu.memory_space<vmem>>, %arg4: memref<1x128xf32, #tpu.memory_space<vmem>>, %arg5: memref<1x128xf32, #tpu.memory_space<vmem>>, %arg6: memref<1x128xf32, #tpu.memory_space<vmem>>) attributes {dimension_semantics = [#tpu.dimension_semantics<parallel>, #tpu.dimension_semantics<arbitrary>], iteration_bounds = array<i64: 1, 1>, scalar_prefetch = 0 : i64, scratch_operands = 2 : i64, tpu.core_type = #tpu.core_type<tc>, window_params = [{transform_indices = @transform_0, window_bounds = array<i64: 4, 128>}, {transform_indices = @transform_1, window_bounds = array<i64: 4, 128>}, {transform_indices = @transform_2, window_bounds = array<i64: 1, 128>}]} {
    %c0_i32 = arith.constant 0 : i32
    %0 = arith.cmpi eq, %arg1, %c0_i32 : i32
    %1 = arith.extui %0 : i1 to i32
    %c0_i32_0 = arith.constant 0 : i32
    %2 = arith.cmpi ne, %1, %c0_i32_0 : i32
    scf.if %2 {
      %cst_20 = arith.constant 0.000000e+00 : f32
      %37 = vector.broadcast %cst_20 : f32 to vector<1x128xf32>
      %c0_21 = arith.constant 0 : index
      %c0_22 = arith.constant 0 : index
      %38 = vector.load %arg5[%c0_21, %c0_22] : memref<1x128xf32, #tpu.memory_space<vmem>>, vector<1x128xf32>
      tpu.vector_store %arg5[%c0_21, %c0_22], %37 {strides = array<i32>} : memref<1x128xf32, #tpu.memory_space<vmem>>, vector<1x128xf32>,
      %cst_23 = arith.constant 0.000000e+00 : f32
      %39 = vector.broadcast %cst_23 : f32 to vector<1x128xf32>
      %c0_24 = arith.constant 0 : index
      %c0_25 = arith.constant 0 : index
      %40 = vector.load %arg6[%c0_24, %c0_25] : memref<1x128xf32, #tpu.memory_space<vmem>>, vector<1x128xf32>
      tpu.vector_store %arg6[%c0_24, %c0_25], %39 {strides = array<i32>} : memref<1x128xf32, #tpu.memory_space<vmem>>, vector<1x128xf32>,
    } else {
    }
    %c0 = arith.constant 0 : index
    %c0_1 = arith.constant 0 : index
    %3 = vector.load %arg2[%c0, %c0_1] : memref<4x128xf32, #tpu.memory_space<vmem>>, vector<4x128xf32>
    %c0_2 = arith.constant 0 : index
    %c0_3 = arith.constant 0 : index
    %4 = vector.load %arg3[%c0_2, %c0_3] : memref<4x128xf32, #tpu.memory_space<vmem>>, vector<4x128xf32>
    %cst = arith.constant 0.000000e+00 : f32
    %5 = vector.broadcast %cst : f32 to vector<4x128xf32>
    %6 = arith.cmpf oge, %4, %5 : vector<4x128xf32>
    %cst_4 = arith.constant 2.550000e+02 : f32
    %7 = vector.broadcast %cst_4 : f32 to vector<4x128xf32>
    %8 = arith.cmpf one, %4, %7 : vector<4x128xf32>
    %9 = arith.andi %6, %8 : vector<4x128xi1>
    %cst_5 = arith.constant 0.000000e+00 : f32
    %10 = vector.broadcast %cst_5 : f32 to vector<4x128xf32>
    %11 = arith.maximumf %3, %10 : vector<4x128xf32>
    %12 = arith.mulf %3, %4 : vector<4x128xf32>
    %13 = arith.subf %11, %12 : vector<4x128xf32>
    %14 = math.absf %3 : vector<4x128xf32>
    %cst_6 = arith.constant 0.000000e+00 : f32
    %15 = vector.broadcast %cst_6 : f32 to vector<4x128xf32>
    %16 = arith.subf %15, %14 : vector<4x128xf32>
    %17 = math.exp %16 : vector<4x128xf32>
    %18 = math.log1p %17 : vector<4x128xf32>
    %19 = arith.addf %13, %18 : vector<4x128xf32>
    %cst_7 = arith.constant 0.000000e+00 : f32
    %20 = vector.broadcast %cst_7 : f32 to vector<4x128xf32>
    %21 = arith.select %9, %19, %20 : vector<4x128xi1>, vector<4x128xf32>
    %22 = arith.extui %9 : vector<4x128xi1> to vector<4x128xi32>
    %23 = arith.sitofp %22 : vector<4x128xi32> to vector<4x128xf32>
    %c0_8 = arith.constant 0 : index
    %c0_9 = arith.constant 0 : index
    %24 = vector.load %arg5[%c0_8, %c0_9] : memref<1x128xf32, #tpu.memory_space<vmem>>, vector<1x128xf32>
    %cst_10 = arith.constant dense<0.000000e+00> : vector<128xf32>
    %25 = vector.multi_reduction <add>, %21, %cst_10 [0] : vector<4x128xf32> to vector<128xf32>
    %26 = vector.shape_cast %25 : vector<128xf32> to vector<1x128xf32>
    %27 = arith.addf %24, %26 : vector<1x128xf32>
    %c0_11 = arith.constant 0 : index
    %c0_12 = arith.constant 0 : index
    %28 = vector.load %arg5[%c0_11, %c0_12] : memref<1x128xf32, #tpu.memory_space<vmem>>, vector<1x128xf32>
    tpu.vector_store %arg5[%c0_11, %c0_12], %27 {strides = array<i32>} : memref<1x128xf32, #tpu.memory_space<vmem>>, vector<1x128xf32>,
    %c0_13 = arith.constant 0 : index
    %c0_14 = arith.constant 0 : index
    %29 = vector.load %arg6[%c0_13, %c0_14] : memref<1x128xf32, #tpu.memory_space<vmem>>, vector<1x128xf32>
    %cst_15 = arith.constant dense<0.000000e+00> : vector<128xf32>
    %30 = vector.multi_reduction <add>, %23, %cst_15 [0] : vector<4x128xf32> to vector<128xf32>
    %31 = vector.shape_cast %30 : vector<128xf32> to vector<1x128xf32>
    %32 = arith.addf %29, %31 : vector<1x128xf32>
    %c0_16 = arith.constant 0 : index
    %c0_17 = arith.constant 0 : index
    %33 = vector.load %arg6[%c0_16, %c0_17] : memref<1x128xf32, #tpu.memory_space<vmem>>, vector<1x128xf32>
    tpu.vector_store %arg6[%c0_16, %c0_17], %32 {strides = array<i32>} : memref<1x128xf32, #tpu.memory_space<vmem>>, vector<1x128xf32>,
    %c0_i32_18 = arith.constant 0 : i32
    %34 = arith.cmpi eq, %arg1, %c0_i32_18 : i32
    %35 = arith.extui %34 : i1 to i32
    %c0_i32_19 = arith.constant 0 : i32
    %36 = arith.cmpi ne, %35, %c0_i32_19 : i32
    scf.if %36 {
      %c0_20 = arith.constant 0 : index
      %c0_21 = arith.constant 0 : index
      %37 = vector.load %arg5[%c0_20, %c0_21] : memref<1x128xf32, #tpu.memory_space<vmem>>, vector<1x128xf32>
      %38 = vector.shape_cast %37 : vector<1x128xf32> to vector<1x1x128xf32>
      %cst_22 = arith.constant dense<0.000000e+00> : vector<1xf32>
      %39 = vector.multi_reduction <add>, %38, %cst_22 [1, 2] : vector<1x1x128xf32> to vector<1xf32>
      %40 = vector.shape_cast %39 : vector<1xf32> to vector<1x1x1xf32>
      %41 = vector.extract %40[0, 0, 0] : f32 from vector<1x1x1xf32>
      %c0_23 = arith.constant 0 : index
      %c0_24 = arith.constant 0 : index
      %42 = vector.load %arg6[%c0_23, %c0_24] : memref<1x128xf32, #tpu.memory_space<vmem>>, vector<1x128xf32>
      %43 = vector.shape_cast %42 : vector<1x128xf32> to vector<1x1x128xf32>
      %cst_25 = arith.constant dense<0.000000e+00> : vector<1xf32>
      %44 = vector.multi_reduction <add>, %43, %cst_25 [1, 2] : vector<1x1x128xf32> to vector<1xf32>
      %45 = vector.shape_cast %44 : vector<1xf32> to vector<1x1x1xf32>
      %46 = vector.extract %45[0, 0, 0] : f32 from vector<1x1x1xf32>
      %47 = tpu.iota {dimensions = array<i32: 1>} : vector<1x128xi32>
      %c0_i32_26 = arith.constant 0 : i32
      %48 = vector.broadcast %c0_i32_26 : i32 to vector<1x128xi32>
      %49 = arith.cmpi eq, %47, %48 : vector<1x128xi32>
      %c1_i32 = arith.constant 1 : i32
      %50 = vector.broadcast %c1_i32 : i32 to vector<1x128xi32>
      %51 = arith.cmpi eq, %47, %50 : vector<1x128xi32>
      %cst_27 = arith.constant 0.000000e+00 : f32
      %52 = vector.broadcast %46 : f32 to vector<1x128xf32>
      %53 = vector.broadcast %cst_27 : f32 to vector<1x128xf32>
      %54 = arith.select %51, %52, %53 : vector<1x128xi1>, vector<1x128xf32>
      %55 = vector.broadcast %41 : f32 to vector<1x128xf32>
      %56 = arith.select %49, %55, %54 : vector<1x128xi1>, vector<1x128xf32>
      %c0_28 = arith.constant 0 : index
      %c0_29 = arith.constant 0 : index
      %57 = vector.load %arg4[%c0_28, %c0_29] : memref<1x128xf32, #tpu.memory_space<vmem>>, vector<1x128xf32>
      tpu.vector_store %arg4[%c0_28, %c0_29], %56 {strides = array<i32>} : memref<1x128xf32, #tpu.memory_space<vmem>>, vector<1x128xf32>,
    } else {
    }
    return
  }
  func.func @transform_0(%arg0: i32, %arg1: i32) -> (i32, i32) {
    %c1_i32 = arith.constant 1 : i32
    %0 = arith.muli %arg0, %c1_i32 : i32
    %1 = arith.addi %0, %arg1 : i32
    %c0_i32 = arith.constant 0 : i32
    %c0_i32_0 = arith.constant 0 : i32
    return %1, %c0_i32 : i32, i32
  }
  func.func @transform_1(%arg0: i32, %arg1: i32) -> (i32, i32) {
    %c1_i32 = arith.constant 1 : i32
    %0 = arith.muli %arg0, %c1_i32 : i32
    %1 = arith.addi %0, %arg1 : i32
    %c0_i32 = arith.constant 0 : i32
    %c0_i32_0 = arith.constant 0 : i32
    return %1, %c0_i32 : i32, i32
  }
  func.func @transform_2(%arg0: i32, %arg1: i32) -> (i32, i32) {
    %c0_i32 = arith.constant 0 : i32
    %c0_i32_0 = arith.constant 0 : i32
    return %arg0, %c0_i32 : i32, i32
  }
}

</mosaic_0001>

<bundles_post_ra>
// kernel: bce_with_logits_loss_2d.1
= control target key start
LH: loop header
LB: loop body
LE: loop exit
PB: predicated region body
PF: predicated region fallthrough
CT: control target
= control target key end

     0   :  { %v158_v0 = vmov 0.0   ;;  %vm77_vm3 = vcmask 1043456   ;;  %vm101_vm5 = vcmask 1040384   ;;  %v123_v58 = vlaneseq  ;;  %s193_s0 = inlined_call_operand.vmem [shape: f32[4,128], index: 0, kind: input, shape index: {}]   ;;  %s194_s1 = inlined_call_operand.vmem [shape: f32[4,128], index: 1, kind: input, shape index: {}]   ;;  %s195_s2 = inlined_call_operand.vmem [shape: f32[1,128], index: 2, kind: output, shape index: {}]  }
   0x1   :  { %49 = vst [vmem:[#allocation2] sm:$0x1] %v158_v0  ;;  %v51_v1 = vld [vmem:[%s193_s0] sm:$0xf] }
   0x2   :  { %v52_v2 = vld [vmem:[%s194_s1] sm:$0xf]  ;;  %50 = vst [vmem:[#allocation3] sm:$0x1] %v158_v0  ;;  %v59_v4 = vand.u32 2147483647, %v51_v1 }
   0x3   :  { %vm53_vm0 = vcmp.ge.f32.partialorder %v52_v2, 0.0  ;;  %vm54_vm1 = vcmp.ne.f32.partialorder %v52_v2, 255.0  ;;  %v56_v20 = vmax.f32 %v51_v1, 0.0  ;;  %v57_v21 = vmul.f32 %v52_v2, %v51_v1 }
   0x4   :  { %vm180_vm2 = vmand %vm53_vm0, %vm54_vm1  ;;  %v60_v6 = vsub.f32 0.0, %v59_v4  ;;  %v124_v59 = vand.u32 127, %v123_v58 }
   0x5   :  { %v148_v5 = vsel %vm180_vm2, 1.0, %v158_v0  ;;  %v58_v26 = vsub.f32 %v56_v20, %v57_v21 }
   0x6   :  { %v61_v7 = vmul.f32 1.442695, %v60_v6  ;;  %v88_v8 = vsel %vm77_vm3, %v148_v5, 0.0  ;;  %vm126_vm6 = vcmp.eq.s32.totalorder %v124_v59, 1  ;;  %vm125_vm7 = vcmp.eq.s32.totalorder %v124_v59, 0 }
   0x7   :  { %v89_v9 = vrot.slane %v88_v8, 4 }
   0x8   :  { %154 = vpow2.f32 %v61_v7  ;;  %v76_v37 = vld [vmem:[#allocation2] sm:$0x1] }
   0x9   :  { %v90_v10 = vadd.f32 %v89_v9, %v88_v8  ;;  %v87_v19 = vld [vmem:[#allocation3] sm:$0x1] }
   0xb   :  { %v91_v11 = vrot.slane %v90_v10, 2 }
   0xd   :  { %v92_v12 = vadd.f32 %v91_v11, %v90_v10 }
   0xe   :  { %v155_v13 = vpop.eup %154 }
   0xf   :  { %v63_v14 = vadd.f32 1.0, %v155_v13  ;;  %v66_v15 = vmul.f32 -0.5, %v155_v13  ;;  %v93_v16 = vrot.slane %v92_v12, 1  ;;  %v69_v22 = vand.u32 2147483647, %v155_v13 }
  0x11   :  { %156 = vlog2.f32 %v63_v14  ;;  %v94_v17 = vadd.f32 %v93_v16, %v92_v12  ;;  %v67_v18 = vadd.f32 1.0, %v66_v15  ;;  %vm70_vm4 = vcmp.lt.f32.partialorder %v69_v22, 0.0004427343 }
  0x13   :  { %v95_v23 = vadd.f32 %v94_v17, %v87_v19  ;;  %v68_v24 = vmul.f32 %v155_v13, %v67_v18 }
  0x15   :  { %96 = vst [vmem:[#allocation3] sm:$0x1] %v95_v23 }
  0x17   :  { %v157_v25 = vpop.eup %156 }
  0x18   :  { %v65_v27 = vmul.f32 0.6931472, %v157_v25 }
  0x1a   :  { %v71_v28 = vsel %vm70_vm4, %v68_v24, %v65_v27 }
  0x1b   :  { %v72_v29 = vadd.f32 %v71_v28, %v58_v26 }
  0x1c   :  { %v112_v42 = vld [vmem:[#allocation3] sm:$0x1] }
  0x1d   :  { %v73_v30 = vsel %vm180_vm2, %v72_v29, 0.0  ;;  %v113_v43 = vsel %vm101_vm5, %v112_v42, 0.0 }
  0x1e   :  { %v78_v31 = vsel %vm77_vm3, %v73_v30, 0.0 }
  0x1f   :  { %v79_v32 = vrot.slane %v78_v31, 4 }
  0x21   :  { %v80_v33 = vadd.f32 %v79_v32, %v78_v31 }
  0x23   :  { %v81_v34 = vrot.slane %v80_v33, 2 }
  0x25   :  { %v82_v35 = vadd.f32 %v81_v34, %v80_v33 }
  0x27   :  { %v83_v36 = vrot.slane %v82_v35, 1 }
  0x29   :  { %v84_v38 = vadd.f32 %v83_v36, %v82_v35 }
  0x2b   :  { %v85_v39 = vadd.f32 %v84_v38, %v76_v37 }
  0x2d   :  { %86 = vst [vmem:[#allocation2] sm:$0x1] %v85_v39 }
  0x34   :  { %v100_v40 = vld [vmem:[#allocation2] sm:$0x1] }
  0x35   :  { %v102_v41 = vsel %vm101_vm5, %v100_v40, 0.0 }
  0x36   :  { %103 = vadd.xlane.f32.xlu0 %v102_v41 }
  0x3e   :  { %114 = vadd.xlane.f32.xlu0 %v113_v43 }
  0xa9   :  { %v104_v44 = vpop.xlane.xlu0 %103 }
  0xaa   :  { %v105_v45 = vrot.slane %v104_v44, 4 }
  0xac   :  { %v106_v46 = vadd.f32 %v105_v45, %v104_v44 }
  0xae   :  { %v107_v47 = vrot.slane %v106_v46, 2 }
  0xb0   :  { %v108_v48 = vadd.f32 %v107_v47, %v106_v46 }
  0xb1   :  { %v115_v49 = vpop.xlane.xlu0 %114 }
  0xb2   :  { %v116_v50 = vrot.slane %v115_v49, 4  ;;  %v109_v51 = vrot.slane %v108_v48, 1 }
  0xb4   :  { %v117_v52 = vadd.f32 %v116_v50, %v115_v49  ;;  %v110_v53 = vadd.f32 %v109_v51, %v108_v48 }
  0xb6   :  { %v118_v54 = vrot.slane %v117_v52, 2  ;;  %149 = vpush %v110_v53 }
  0xb8   :  { %v119_v55 = vadd.f32 %v118_v54, %v117_v52 }
  0xba   :  { %v120_v56 = vrot.slane %v119_v55, 1 }
  0xbc   :  { %v121_v57 = vadd.f32 %v120_v56, %v119_v55 }
  0xbe   :  { %151 = vpush %v121_v57 }
  0xe7   :  { %s150_s0 = spop %149 }
  0xe8   :  { %v129_v61 = vstv %s150_s0 }
  0xef   :  { %s152_s1 = spop %151 }
  0xf0   :  { %v127_v60 = vstv %s152_s1 }
  0xf1   :  { %v128_v62 = vsel %vm126_vm6, %v127_v60, 0.0 }
  0xf2   :  { %v130_v63 = vsel %vm125_vm7, %v129_v61, %v128_v62 }
  0xf3   :  { %131 = vst [vmem:[%s195_s2] sm:$0x1] %v130_v63 }

</bundles_post_ra>
